<compile_context>
chip_gen: v6e
topology: v6e:2x2x1
jax: 0.10.0
libtpu: 0.0.40
codegen_flags: <defaults>
</compile_context>

<pallas_src>
import jax
import jax.numpy as jnp
from jax.experimental import pallas as pl
from jax.experimental.pallas import tpu as pltpu

NEG_INF = -1e9  # stand-in for the module-level NEG_INF constant


def _actor_kernel(thresh_ref, state_ref, w_ref, gumbel_ref, action_ref, packed_ref):
    # All math in the transposed (A, TB) orientation: A on sublanes, batch on lanes.
    state = state_ref[...]                                   # (TB, H) f32
    w = w_ref[...]                                           # (A, H)  f32, VMEM-resident

    H = state.shape[1]
    if H >= 256:
        # bf16 operands feed the 256-wide MXU natively on v6e/v7x (and v5e's bf16 MXU);
        # f32 accumulator keeps accuracy.  At tiny H the MXU is idle anyway: stay f32.
        lhs, rhs = w.astype(jnp.bfloat16), state.astype(jnp.bfloat16)
    else:
        lhs, rhs = w, state

    # logitsT = W @ state^T, contracting on H; no explicit transpose materialized.
    logits = jax.lax.dot_general(
        lhs, rhs,
        dimension_numbers=(((1,), (1,)), ((), ())),
        preferred_element_type=jnp.float32)                  # (A, TB)

    A, TB = logits.shape
    row = jax.lax.broadcasted_iota(jnp.int32, (A, TB), 0)    # action index per sublane
    mask = row < thresh_ref[...]                             # (1, TB) int32 broadcast
    # Note: if a row's threshold is 0 every logit is NEG_INF and the sample degenerates
    # to uniform over all actions — same behavior as the PyTorch reference.
    logits = jnp.where(mask, logits, jnp.float32(NEG_INF))

    # Numerically-stable log-softmax over the action (sublane) axis.
    m = jnp.max(logits, axis=0, keepdims=True)               # (1, TB)
    shifted = logits - m
    s = jnp.sum(jnp.exp(shifted), axis=0, keepdims=True)     # (1, TB)
    logp = shifted - jnp.log(s)                              # (A, TB)
    probs = jnp.exp(logp)                                    # (A, TB), consistent with logp

    # Gumbel-max sampling; argmax over sublanes done with max + first-index-of-max
    # so every intermediate stays a lane-dense 2D array.
    z = logits + gumbel_ref[...]                             # (A, TB)
    zmax = jnp.max(z, axis=0, keepdims=True)                 # (1, TB)
    idx_or_big = jnp.where(z >= zmax, row, jnp.int32(A))     # smallest idx on ties
    action = jnp.min(idx_or_big, axis=0, keepdims=True)      # (1, TB) int32

    action_ref[...] = action.astype(jnp.int32)
    packed_ref[0] = logp                                     # slab row 0: log_prob^T
    packed_ref[1] = probs                                    # slab row 1: action_probs^T


def _choose_batch_tile(B: int, cap: int = 512) -> int:
    """Pick a batch tile: big (amortize ~0.35us/step), divides B, and leaves grid>=2
    when B >= 256 so both v7x TensorCores get work."""
    if B <= cap:
        return B
    limit = min(cap, B // 2) if B >= 256 else cap
    # Prefer lane-dense (multiple of 128) divisors.
    tb = limit - (limit % 128)
    while tb >= 128:
        if B % tb == 0:
            return tb
        tb -= 128
    for tb in range(limit, 0, -1):
        if B % tb == 0:
            return tb
    return B


def actor_forward(state, weight, num_devices=None, *, action_s, rng_key):
    """state: (B, H) f32; weight: (A, H) f32 (nn.Linear layout, used as-is);
       num_devices: (B,) int or None; rng_key: jax PRNG key for the categorical sample.
       Returns (action (B,), log_prob (B, A), action_probs (B, A))."""
    B, H = state.shape
    A = weight.shape[0]

    if num_devices is None:
        thresh = jnp.full((1, B), A, dtype=jnp.int32)                      # no masking
    else:
        thresh = (num_devices.astype(jnp.int32) * action_s).reshape(1, B)

    # Host-side Gumbel noise in the transposed (A, B) layout the kernel consumes.
    gumbel = jax.random.gumbel(rng_key, (A, B), dtype=jnp.float32)

    TB = _choose_batch_tile(B)
    assert B % TB == 0, "batch must be a multiple of the batch tile"
    grid = (B // TB,)

    # Explicit VMEM budget (double-buffered streams + pinned weight), v7x-safe (64 MiB).
    vmem_bytes = (2 * TB * H * 4 + 2 * A * H * 4 + 2 * A * TB * 4 + 2 * TB * 4
                  + 2 * TB * 4 + 2 * 2 * A * TB * 4)
    vmem_limit = int(min(max(4 << 20, 2 * vmem_bytes), 64 << 20))

    kernel = pl.pallas_call(
        _actor_kernel,
        grid_spec=pltpu.PrefetchScalarGridSpec(
            num_scalar_prefetch=0,
            grid=grid,
            in_specs=[
                pl.BlockSpec((1, TB), lambda i: (0, i)),    # thresh (1, B)
                pl.BlockSpec((TB, H), lambda i: (i, 0)),    # state  (B, H)
                pl.BlockSpec((A, H), lambda i: (0, 0)),     # weight (A, H), resident
                pl.BlockSpec((A, TB), lambda i: (0, i)),    # gumbel (A, B)
            ],
            out_specs=[
                pl.BlockSpec((1, TB), lambda i: (0, i)),        # action row (1, B)
                pl.BlockSpec((2, A, TB), lambda i: (0, 0, i)),  # [log_prob^T ; probs^T]
            ],
        ),
        out_shape=[
            jax.ShapeDtypeStruct((1, B), jnp.int32),
            jax.ShapeDtypeStruct((2, A, B), jnp.float32),
        ],
        compiler_params=pltpu.CompilerParams(
            dimension_semantics=("parallel",),
            vmem_limit_bytes=vmem_limit),
    )
    action_row, packed = kernel(thresh, state.astype(jnp.float32), weight, gumbel)
    # Restore the (B, A) orientation the module's callers expect (cheap XLA transpose).
    return action_row[0], packed[0].T, packed[1].T


def _reference_forward(state, weight, num_devices, action_s):
    """Pure-JAX reference matching the PyTorch forward (deterministic parts)."""
    logits = state @ weight.T
    B, A = logits.shape
    if num_devices is not None:
        col = jnp.arange(A)[None, :]
        mask = col < (num_devices.astype(jnp.int32) * action_s)[:, None]
        logits = jnp.where(mask, logits, NEG_INF)
    log_prob = jax.nn.log_softmax(logits, axis=-1)
    probs = jax.nn.softmax(logits, axis=-1)
    return log_prob, probs


if __name__ == "__main__":
    # Small shapes consistent with the module: batch=8, hvec_dim=128, action_dim=8.
    B, H, A = 8, 128, 8
    ACTION_S = 2          # Actor._action_s (dynamic case: output dim = action_s * MAX_ROWS)

    key = jax.random.PRNGKey(0)
    k_state, k_w, k_sample = jax.random.split(key, 3)

    state = jax.random.normal(k_state, (B, H), dtype=jnp.float32)

    # Module __init__ sets the logits weight to zeros; also run a non-zero
    # deterministic weight to exercise the matmul path non-trivially.
    weight_zero = jnp.zeros((A, H), dtype=jnp.float32)
    weight_rand = 0.05 * jax.random.normal(k_w, (A, H), dtype=jnp.float32)

    # num_devices per batch element (masking path), values in [1, A // action_s]
    num_devices = jnp.array([1, 2, 3, 4, 1, 2, 3, 4], dtype=jnp.int32)

    ok = True
    for weight in (weight_zero, weight_rand):
        action, log_prob, action_probs = actor_forward(
            state, weight, num_devices, action_s=ACTION_S, rng_key=k_sample)
        jax.block_until_ready((action, log_prob, action_probs))

        ref_logp, ref_probs = _reference_forward(state, weight, num_devices, ACTION_S)

        ok &= bool(jnp.allclose(log_prob, ref_logp, atol=1e-4, rtol=1e-4))
        ok &= bool(jnp.allclose(action_probs, ref_probs, atol=1e-5, rtol=1e-4))
        # sampled actions must respect the mask (thresholds here are all >= 1)
        ok &= bool(jnp.all(action < num_devices * ACTION_S))
        ok &= bool(jnp.all(action >= 0))

    if ok:
        print("KERNEL_OK")
    else:
        print("KERNEL_MISMATCH")
</pallas_src>

<mosaic_0001>
module attributes {stable_mosaic.version = 11 : i64} {
  func.func @_actor_kernel(%arg0: i32, %arg1: memref<1x8xi32, #tpu.memory_space<vmem>>, %arg2: memref<8x128xf32, #tpu.memory_space<vmem>>, %arg3: memref<8x128xf32, #tpu.memory_space<vmem>>, %arg4: memref<8x8xf32, #tpu.memory_space<vmem>>, %arg5: memref<1x8xi32, #tpu.memory_space<vmem>>, %arg6: memref<2x8x8xf32, #tpu.memory_space<vmem>>) attributes {dimension_semantics = [#tpu.dimension_semantics<parallel>], iteration_bounds = array<i64: 1>, scalar_prefetch = 0 : i64, scratch_operands = 0 : i64, tpu.core_type = #tpu.core_type<tc>, window_params = [{transform_indices = @transform_0, window_bounds = array<i64: 1, 8>}, {transform_indices = @transform_1, window_bounds = array<i64: 8, 128>}, {pipeline_mode = #tpu.pipeline_mode<synchronous>, transform_indices = @transform_2, window_bounds = array<i64: 8, 128>}, {transform_indices = @transform_3, window_bounds = array<i64: 8, 8>}, {transform_indices = @transform_4, window_bounds = array<i64: 1, 8>}, {transform_indices = @transform_5, window_bounds = array<i64: 2, 8, 8>}]} {
    %c0 = arith.constant 0 : index
    %c0_0 = arith.constant 0 : index
    %0 = vector.load %arg2[%c0, %c0_0] : memref<8x128xf32, #tpu.memory_space<vmem>>, vector<8x128xf32>
    %c0_1 = arith.constant 0 : index
    %c0_2 = arith.constant 0 : index
    %1 = vector.load %arg3[%c0_1, %c0_2] : memref<8x128xf32, #tpu.memory_space<vmem>>, vector<8x128xf32>
    %cst = arith.constant dense<0.000000e+00> : vector<8x8xf32>
    %2 = tpu.matmul %1, %0, %cst {dimension_numbers = #tpu.dot_dimension_numbers<[1], [1], [0], [0], [0, 0, 1, 0], [], []>} : vector<8x128xf32>, vector<8x128xf32>, vector<8x8xf32> -> vector<8x8xf32>
    %3 = tpu.iota {dimensions = array<i32: 0>} : vector<8x8xi32>
    %c0_3 = arith.constant 0 : index
    %c0_4 = arith.constant 0 : index
    %4 = vector.load %arg1[%c0_3, %c0_4] : memref<1x8xi32, #tpu.memory_space<vmem>>, vector<1x8xi32>
    %5 = vector.broadcast %4 : vector<1x8xi32> to vector<8x8xi32>
    %6 = arith.cmpi slt, %3, %5 : vector<8x8xi32>
    %cst_5 = arith.constant -1.000000e+09 : f32
    %7 = vector.broadcast %cst_5 : f32 to vector<8x8xf32>
    %8 = arith.select %6, %2, %7 : vector<8x8xi1>, vector<8x8xf32>
    %cst_6 = arith.constant dense<0xFF800000> : vector<8xf32>
    %9 = vector.multi_reduction <maximumf>, %8, %cst_6 [0] : vector<8x8xf32> to vector<8xf32>
    %10 = vector.shape_cast %9 : vector<8xf32> to vector<1x8xf32>
    %11 = vector.broadcast %10 : vector<1x8xf32> to vector<8x8xf32>
    %12 = arith.subf %8, %11 : vector<8x8xf32>
    %13 = math.exp %12 : vector<8x8xf32>
    %cst_7 = arith.constant dense<0.000000e+00> : vector<8xf32>
    %14 = vector.multi_reduction <add>, %13, %cst_7 [0] : vector<8x8xf32> to vector<8xf32>
    %15 = vector.shape_cast %14 : vector<8xf32> to vector<1x8xf32>
    %16 = math.log %15 : vector<1x8xf32>
    %17 = vector.broadcast %16 : vector<1x8xf32> to vector<8x8xf32>
    %18 = arith.subf %12, %17 : vector<8x8xf32>
    %19 = math.exp %18 : vector<8x8xf32>
    %c0_8 = arith.constant 0 : index
    %c0_9 = arith.constant 0 : index
    %20 = vector.load %arg4[%c0_8, %c0_9] : memref<8x8xf32, #tpu.memory_space<vmem>>, vector<8x8xf32>
    %21 = arith.addf %8, %20 : vector<8x8xf32>
    %cst_10 = arith.constant dense<0xFF800000> : vector<8xf32>
    %22 = vector.multi_reduction <maximumf>, %21, %cst_10 [0] : vector<8x8xf32> to vector<8xf32>
    %23 = vector.shape_cast %22 : vector<8xf32> to vector<1x8xf32>
    %24 = vector.broadcast %23 : vector<1x8xf32> to vector<8x8xf32>
    %25 = arith.cmpf oge, %21, %24 : vector<8x8xf32>
    %c8_i32 = arith.constant 8 : i32
    %26 = vector.broadcast %c8_i32 : i32 to vector<8x8xi32>
    %27 = arith.select %25, %3, %26 : vector<8x8xi1>, vector<8x8xi32>
    %cst_11 = arith.constant dense<2147483647> : vector<8xi32>
    %28 = vector.multi_reduction <minsi>, %27, %cst_11 [0] : vector<8x8xi32> to vector<8xi32>
    %29 = vector.shape_cast %28 : vector<8xi32> to vector<1x8xi32>
    %c0_12 = arith.constant 0 : index
    %c0_13 = arith.constant 0 : index
    %30 = vector.load %arg5[%c0_12, %c0_13] : memref<1x8xi32, #tpu.memory_space<vmem>>, vector<1x8xi32>
    tpu.vector_store %arg5[%c0_12, %c0_13], %29 {strides = array<i32>} : memref<1x8xi32, #tpu.memory_space<vmem>>, vector<1x8xi32>,
    %c0_14 = arith.constant 0 : index
    %c0_15 = arith.constant 0 : index
    %c0_16 = arith.constant 0 : index
    %31 = vector.load %arg6[%c0_14, %c0_15, %c0_16] : memref<2x8x8xf32, #tpu.memory_space<vmem>>, vector<1x8x8xf32>
    %32 = vector.shape_cast %31 : vector<1x8x8xf32> to vector<8x8xf32>
    %33 = vector.shape_cast %18 : vector<8x8xf32> to vector<1x8x8xf32>
    tpu.vector_store %arg6[%c0_14, %c0_15, %c0_16], %33 {strides = array<i32>} : memref<2x8x8xf32, #tpu.memory_space<vmem>>, vector<1x8x8xf32>,
    %c1 = arith.constant 1 : index
    %c0_17 = arith.constant 0 : index
    %c0_18 = arith.constant 0 : index
    %34 = vector.load %arg6[%c1, %c0_17, %c0_18] : memref<2x8x8xf32, #tpu.memory_space<vmem>>, vector<1x8x8xf32>
    %35 = vector.shape_cast %34 : vector<1x8x8xf32> to vector<8x8xf32>
    %36 = vector.shape_cast %19 : vector<8x8xf32> to vector<1x8x8xf32>
    tpu.vector_store %arg6[%c1, %c0_17, %c0_18], %36 {strides = array<i32>} : memref<2x8x8xf32, #tpu.memory_space<vmem>>, vector<1x8x8xf32>,
    return
  }
  func.func @transform_0(%arg0: i32) -> (i32, i32) {
    %c0_i32 = arith.constant 0 : i32
    %c0_i32_0 = arith.constant 0 : i32
    return %c0_i32, %arg0 : i32, i32
  }
  func.func @transform_1(%arg0: i32) -> (i32, i32) {
    %c0_i32 = arith.constant 0 : i32
    %c0_i32_0 = arith.constant 0 : i32
    return %arg0, %c0_i32 : i32, i32
  }
  func.func @transform_2(%arg0: i32) -> (i32, i32) {
    %c0_i32 = arith.constant 0 : i32
    %c0_i32_0 = arith.constant 0 : i32
    %c0_i32_1 = arith.constant 0 : i32
    return %c0_i32, %c0_i32_0 : i32, i32
  }
  func.func @transform_3(%arg0: i32) -> (i32, i32) {
    %c0_i32 = arith.constant 0 : i32
    %c0_i32_0 = arith.constant 0 : i32
    return %c0_i32, %arg0 : i32, i32
  }
  func.func @transform_4(%arg0: i32) -> (i32, i32) {
    %c0_i32 = arith.constant 0 : i32
    %c0_i32_0 = arith.constant 0 : i32
    return %c0_i32, %arg0 : i32, i32
  }
  func.func @transform_5(%arg0: i32) -> (i32, i32, i32) {
    %c0_i32 = arith.constant 0 : i32
    %c0_i32_0 = arith.constant 0 : i32
    %c0_i32_1 = arith.constant 0 : i32
    return %c0_i32, %c0_i32_0, %arg0 : i32, i32, i32
  }
}

</mosaic_0001>

<bundles_post_ra>
// kernel: tpu_custom_call.1
= control target key start
LH: loop header
LB: loop body
LE: loop exit
PB: predicated region body
PF: predicated region fallthrough
CT: control target
= control target key end

     0   :  { %11 = vsyncpa [#allocation3], 0  ;;  %s449_s0 = inlined_call_operand.hbm [shape: s32[1,8], index: 0, kind: input, shape index: {}]   ;;  %s450_s1 = inlined_call_operand.hbm [shape: f32[8,128], index: 1, kind: input, shape index: {}]   ;;  %s451_s2 = inlined_call_operand.hbm [shape: f32[8,128], index: 2, kind: input, shape index: {}]   ;;  %s452_s3 = inlined_call_operand.hbm [shape: f32[8,8], index: 3, kind: input, shape index: {}]   ;;  %s453_s4 = inlined_call_operand.hbm [shape: s32[1,8], index: 4, kind: output, shape index: {0}]   ;;  %s454_s5 = inlined_call_operand.hbm [shape: f32[2,8,8], index: 5, kind: output, shape index: {1}]  }
   0x1   :  { %12 = vsyncpa [#allocation6], 0 }
   0x2   :  { %13 = vsyncpa [#allocation9], 0 }
   0x3   :  { %14 = vsyncpa [#allocation4], 0 }
   0x4   :  { %15 = vsyncpa [#allocation12], 0  ;;  %s385_s18 = smov [#allocation5]   ;;  %s386_s20 = smov [#allocation2]  }
   0x5   :  { %s32_s19 = sshll.u32 %s385_s18, 4  ;;  %s22_s21 = sshll.u32 %s386_s20, 4  ;;  %s33_s19 = int_to_ptr.vmem [resolvable:$true] %s32_s19  ;;  %s23_s21 = int_to_ptr.vmem [resolvable:$true] %s22_s21 }
   0x6   :  { %s263_s22 = scalar_lea.vmem %s33_s19, 128  ;;  %p268_p1 = scmp.lt.s32.totalorder %s33_s19, %s33_s19 }
   0x7   :  { %p264_p0 = scmp.ne.s32.totalorder %s33_s19, %s263_s22  ;;  %p269_p2 = scmp.lt.s32.totalorder %s263_s22, %s263_s22 }
   0x9   :  { %p270_p3 = por %p269_p2, %p268_p1 }
   0xb   :  { %p271_p4 = pnand %p270_p3, %p264_p0 }
   0xd   :  { %274 = shalt.err (!%p271_p4)
}
   0xe   :  { %35 = dma.hbm_to_vmem [thread:$0]  %s450_s1, 128, %s33_s19, [#allocation6]  }
   0xf   :  { %s283_s25 = scalar_lea.vmem %s23_s21, 16  ;;  %s287_s26 = scalar_lea.vmem %s23_s21, 32 }
  0x10   :  { %p284_p5 = scmp.ne.s32.totalorder %s23_s21, %s283_s25  ;;  %p288_p6 = scmp.lt.s32.totalorder %s23_s21, %s23_s21 }
  0x11   :  { %p289_p7 = scmp.lt.s32.totalorder %s287_s26, %s283_s25 }
  0x13   :  { %p290_p8 = por %p289_p7, %p288_p6 }
  0x15   :  { %p291_p9 = pnand %p290_p8, %p284_p5 }
  0x17   :  { %294 = shalt.err (!%p291_p9)
}
  0x18   :  { %25 = dma.hbm_to_vmem [thread:$0]  %s449_s0, 16, %s23_s21, [#allocation3]  }
  0x19   :  { %s387_s29 = smov [#allocation7]   ;;  %s388_s6 = smov [#allocation8]  }
  0x1a   :  { %s42_s30 = sshll.u32 %s387_s29, 4  ;;  %s52_s7 = sshll.u32 %s388_s6, 4  ;;  %s43_s30 = int_to_ptr.vmem [resolvable:$true] %s42_s30  ;;  %s53_s7 = int_to_ptr.vmem [resolvable:$true] %s52_s7 }
  0x1b   :  { %s303_s8 = scalar_lea.vmem %s43_s30, 128  ;;  %p308_p11 = scmp.lt.s32.totalorder %s43_s30, %s43_s30 }
  0x1c   :  { %p304_p10 = scmp.ne.s32.totalorder %s43_s30, %s303_s8  ;;  %p309_p12 = scmp.lt.s32.totalorder %s303_s8, %s303_s8 }
  0x1e   :  { %p310_p13 = por %p309_p12, %p308_p11 }
  0x20   :  { %p311_p0 = pnand %p310_p13, %p304_p10 }
  0x22   :  { %314 = shalt.err (!%p311_p0)
}
  0x23   :  { %45 = dma.hbm_to_vmem [thread:$0]  %s451_s2, 128, %s43_s30, [#allocation6]  }
  0x24   :  { %s323_s10 = scalar_lea.vmem %s53_s7, 128  ;;  %p328_p2 = scmp.lt.s32.totalorder %s53_s7, %s53_s7 }
  0x25   :  { %p324_p1 = scmp.ne.s32.totalorder %s53_s7, %s323_s10  ;;  %p329_p3 = scmp.lt.s32.totalorder %s323_s10, %s323_s10 }
  0x27   :  { %p330_p4 = por %p329_p3, %p328_p2 }
  0x29   :  { %p331_p5 = pnand %p330_p4, %p324_p1 }
  0x2b   :  { %334 = shalt.err (!%p331_p5)
}
  0x2c   :  { %55 = dma.hbm_to_vmem [thread:$0]  %s452_s3, 128, %s53_s7, [#allocation9]  }
  0x2d   :  { %375 = dma.done.wait [#allocation3], 16  }
  0x2e   :  { %376 = vsyncadd [#allocation3], 4294967280 }
  0x2f   :  { %377 = dma.done.wait [#allocation6], 256  }
  0x30   :  { %378 = vsyncadd [#allocation6], 4294967040 }
  0x31   :  { %379 = dma.done.wait [#allocation9], 128  }
  0x32   :  { %380 = vsyncadd [#allocation9], 4294967168  ;;  %v389_v0 = vmov 0.0   ;;  %vm390_vm0 = vmmov 0   ;;  %v68_v1 = vld [vmem:[#allocation5] sm:$0xff]  ;;  %v69_v2 = vld [vmem:[#allocation7] sm:$0xff]  ;;  %v140_v3 = vlaneseq }
  0x33   :  { %234 = vmatprep.subr.mxu0 %v389_v0  ;;  %236 = vmatprep.mubr.msk.f32.mxu0 %vm390_vm0, %v389_v0  ;;  %v231_v5 = vld [vmem:[#allocation2] ss:$0 sm:$0xff]  ;;  %vm149_vm2 = vcmask 64512   ;;  %v172_v6 = vld [vmem:[#allocation8] sm:$0xff]  ;;  %s391_s2 = smov [#allocation10]   ;;  %vm193_vm6 = vcmask 57344  }
  0x34   :  { %235 = vmatpush3.xpose.msra.mxu0 %v68_v1  ;;  %v141_v4 = vshrl.u32 %v140_v3, 7  ;;  %s204_s3 = sshll.u32 %s391_s2, 4  ;;  %s205_s3 = int_to_ptr.vmem [resolvable:$true] %s204_s3 }
  0x35   :  { %s335_s12 = scalar_lea.vmem %s205_s3, 16  ;;  %s339_s13 = scalar_lea.vmem %s205_s3, 32 }
  0x36   :  { %vm147_vm1 = vcmp.lt.s32.totalorder %v141_v4, %v231_v5  ;;  %p336_p6 = scmp.ne.s32.totalorder %s205_s3, %s335_s12  ;;  %p340_p7 = scmp.lt.s32.totalorder %s205_s3, %s205_s3 }
  0x37   :  { %237 = vmatmul.mubr.f32.vlgmr.msra.gmra.mxu0 %v69_v2  ;;  %p341_p8 = scmp.lt.s32.totalorder %s339_s13, %s335_s12 }
  0x39   :  { %p342_p9 = por %p341_p8, %p340_p7 }
  0x3b   :  { %p343_p10 = pnand %p342_p9, %p336_p6 }
  0xf7   :  { %v136_v7 = vpop.f32.mrf.mxu0 }
  0xf8   :  { %v148_v8 = vsel %vm147_vm1, %v136_v7, -1e+09 }
  0xf9   :  { %v150_v9 = vsel %vm149_vm2, %v148_v8, -inf  ;;  %v173_v10 = vadd.f32 %v172_v6, %v148_v8  ;;  %v238_v11 = vpop.f32.mrf.mxu0 }
  0xfa   :  { %v151_v12 = vrot.slane %v150_v9, 4 }
  0xfb   :  { %v174_v13 = vsel %vm149_vm2, %v173_v10, -inf }
  0xfc   :  { %v152_v14 = vmax.f32 %v150_v9, %v151_v12  ;;  %v175_v15 = vrot.slane %v174_v13, 4 }
  0xfe   :  { %v153_v16 = vrot.slane %v152_v14, 2  ;;  %v176_v17 = vmax.f32 %v174_v13, %v175_v15 }
 0x100   :  { %v154_v18 = vmax.f32 %v152_v14, %v153_v16  ;;  %v177_v19 = vrot.slane %v176_v17, 2 }
 0x102   :  { %v155_v20 = vrot.slane %v154_v18, 1  ;;  %v178_v21 = vmax.f32 %v176_v17, %v177_v19 }
 0x104   :  { %v156_v22 = vmax.f32 %v154_v18, %v155_v20  ;;  %v179_v23 = vrot.slane %v178_v21, 1 }
 0x106   :  { %v157_v24 = vsub.f32 %v148_v8, %v156_v22  ;;  %v180_v25 = vmax.f32 %v178_v21, %v179_v23 }
 0x108   :  { %v158_v26 = vmul.f32 1.442695, %v157_v24  ;;  %vm181_vm3 = vcmp.ge.f32.partialorder %v173_v10, %v180_v25 }
 0x109   :  { %v182_v27 = vsel %vm181_vm3, %v141_v4, 8 }
 0x10a   :  { %249 = vpow2.f32 %v158_v26  ;;  %v183_v28 = vsel %vm149_vm2, %v182_v27, 2147483647 }
 0x10b   :  { %v184_v29 = vrot.slane %v183_v28, 4 }
 0x10d   :  { %vm185_vm4 = vcmp.lt.s32.totalorder %v183_v28, %v184_v29 }
 0x10e   :  { %v186_v30 = vsel %vm185_vm4, %v183_v28, %v184_v29 }
 0x10f   :  { %v187_v31 = vrot.slane %v186_v30, 2 }
 0x111   :  { %vm188_vm5 = vcmp.lt.s32.totalorder %v186_v30, %v187_v31 }
 0x112   :  { %v189_v32 = vsel %vm188_vm5, %v186_v30, %v187_v31 }
 0x113   :  { %v190_v33 = vrot.slane %v189_v32, 1 }
 0x115   :  { %vm191_vm7 = vcmp.lt.s32.totalorder %v189_v32, %v190_v33 }
 0x116   :  { %v192_v34 = vsel %vm191_vm7, %v189_v32, %v190_v33 }
 0x117   :  { %v250_v35 = vpop.eup %249  ;;  %194 = vst.msk [vmem:[#allocation10] sm:$0x1] %vm193_vm6, %v192_v34 }
 0x118   :  { %v160_v36 = vsel %vm149_vm2, %v250_v35, 0.0 }
 0x119   :  { %346 = shalt.err (!%p343_p10)
}
 0x11a   :  { %207 = dma.vmem_to_hbm [thread:$0]  %s205_s3, 16, %s453_s4, [#allocation4]   ;;  %v161_v37 = vrot.slane %v160_v36, 4 }
 0x11b   :  { %s392_s16 = smov [#allocation11]  }
 0x11c   :  { %v162_v38 = vadd.f32 %v161_v37, %v160_v36  ;;  %s213_s17 = sshll.u32 %s392_s16, 4  ;;  %s214_s17 = int_to_ptr.vmem [resolvable:$true] %s213_s17 }
 0x11d   :  { %s355_s4 = scalar_lea.vmem %s214_s17, 256  ;;  %p360_p12 = scmp.lt.s32.totalorder %s214_s17, %s214_s17 }
 0x11e   :  { %v163_v39 = vrot.slane %v162_v38, 2  ;;  %p356_p11 = scmp.ne.s32.totalorder %s214_s17, %s355_s4  ;;  %p361_p13 = scmp.lt.s32.totalorder %s355_s4, %s355_s4 }
 0x120   :  { %v164_v40 = vadd.f32 %v163_v39, %v162_v38  ;;  %p362_p0 = por %p361_p13, %p360_p12 }
 0x122   :  { %v165_v41 = vrot.slane %v164_v40, 1  ;;  %p363_p1 = pnand %p362_p0, %p356_p11 }
 0x124   :  { %v166_v42 = vadd.f32 %v165_v41, %v164_v40 }
 0x126   :  { %251 = vlog2.f32 %v166_v42 }
 0x133   :  { %v252_v43 = vpop.eup %251 }
 0x134   :  { %v168_v44 = vmul.f32 0.6931472, %v252_v43 }
 0x136   :  { %v169_v45 = vsub.f32 %v157_v24, %v168_v44 }
 0x138   :  { %v170_v46 = vmul.f32 1.442695, %v169_v45  ;;  %195 = vst.msk [vmem:[#allocation11] sm:$0xff] %vm149_vm2, %v169_v45 }
 0x13a   :  { %253 = vpow2.f32 %v170_v46 }
 0x147   :  { %v254_v47 = vpop.eup %253 }
 0x148   :  { %197 = vst.msk [vmem:[#allocation11 + $0x8] sm:$0xff] %vm149_vm2, %v254_v47 }
 0x149   :  { %366 = shalt.err (!%p363_p1)
}
 0x14a   :  { %s393_s18 = smov 128   ;;  %s394_s19 = smov 8  }
 0x14b   :  { %219 = dma.vmem_to_hbm [thread:$0]  %s214_s17, 256, %s454_s5, [#allocation12], %s393_s18, %s393_s18, %s394_s19  }
 0x14c   :  { %381 = dma.done.wait [#allocation4], 16  }
 0x14d   :  { %382 = vsyncadd [#allocation4], 4294967280 }
 0x14e   :  { %383 = dma.done.wait [#allocation12], 256  }
 0x14f   :  { %384 = vsyncadd [#allocation12], 4294967040 }
 0x150   :  { %226 = vsyncpa [#allocation3], 1 }
 0x151   :  { %227 = vsyncpa [#allocation6], 1 }
 0x152   :  { %228 = vsyncpa [#allocation9], 1 }
 0x153   :  { %229 = vsyncpa [#allocation4], 1 }
 0x154   :  { %230 = vsyncpa [#allocation12], 1 }

</bundles_post_ra>
